<compile_context>
chip_gen: v7x
topology: tpu7x:2x2x1
jax: 0.10.0
libtpu: 0.0.40
codegen_flags: <defaults>
</compile_context>

<pallas_src>
import jax
import jax.numpy as jnp
from jax.experimental import pallas as pl
from jax.experimental.pallas import tpu as pltpu

_LANES = 128
_MAX_WIDTH = 4096
_XLA_BYPASS_BYTES = 128 * 1024        # below this: let XLA fuse the ReLU
_SINGLE_BLOCK_MAX_BYTES = 512 * 1024  # below this: one full-array block, no grid


def relu_kernel(x_ref, o_ref):
    # Elementwise ReLU on the whole VMEM tile (VPU max against zero).
    x = x_ref[...]
    o_ref[...] = jnp.maximum(x, jnp.zeros_like(x))


def _choose_width(n):
    """Largest lane-dense slab width (multiple of 128, <= 4096) dividing n exactly."""
    if n <= 0 or n % _LANES != 0:
        return None
    for w in range(_MAX_WIDTH, 0, -_LANES):
        if n % w == 0:
            return w
    return _LANES  # unreachable: n % 128 == 0 guarantees the loop hits 128


_TILE_BYTES_CACHE = None


def _tile_bytes_for_this_chip():
    """Generation-aware tile size: keep 4x tile + 4 MiB headroom well under VMEM."""
    global _TILE_BYTES_CACHE
    if _TILE_BYTES_CACHE is None:
        try:
            info = pltpu.get_tpu_info()
            vmem = int(getattr(info, "vmem_capacity_bytes", 64 << 20))
        except Exception:
            vmem = 64 << 20  # conservative: assume v7x-sized VMEM (64 MiB / TC)
        # v5e/v6e (128 MiB VMEM): 16 MiB tiles -> 68 MiB budget.
        # v7x (64 MiB VMEM/TC):    8 MiB tiles -> 36 MiB budget.
        _TILE_BYTES_CACHE = (16 << 20) if vmem >= (128 << 20) else (8 << 20)
    return _TILE_BYTES_CACHE


def _relu_2d(x2d, tile_bytes):
    """ReLU of a lane-dense (rows, w) slab via Pallas (single block or tiled grid)."""
    rows, w = x2d.shape
    dtype = x2d.dtype
    itemsize = jnp.dtype(dtype).itemsize
    total_bytes = rows * w * itemsize

    if total_bytes <= _SINGLE_BLOCK_MAX_BYTES:
        # Small enough: single full-array block, no grid -> no per-step overhead.
        return pl.pallas_call(
            relu_kernel,
            out_shape=jax.ShapeDtypeStruct((rows, w), dtype),
        )(x2d)

    # Streamed path: multi-MiB lane-dense tiles, HBM -> VMEM -> HBM, double-buffered.
    tile_rows = max(32, ((tile_bytes // (w * itemsize)) // 32) * 32)
    tile_rows = min(tile_rows, ((rows + 31) // 32) * 32)  # don't exceed the array
    grid = (pl.cdiv(rows, tile_rows),)  # ragged last block is masked by Pallas
    # 2 buffers x (in tile + out tile) + headroom; fits every generation's VMEM.
    vmem_limit = int(4 * tile_rows * w * itemsize + (4 << 20))

    return pl.pallas_call(
        relu_kernel,
        out_shape=jax.ShapeDtypeStruct((rows, w), dtype),
        grid_spec=pltpu.PrefetchScalarGridSpec(
            num_scalar_prefetch=0,
            grid=grid,
            in_specs=[pl.BlockSpec((tile_rows, w), lambda i: (i, 0))],
            out_specs=pl.BlockSpec((tile_rows, w), lambda i: (i, 0)),
        ),
        compiler_params=pltpu.CompilerParams(
            dimension_semantics=("parallel",),  # megacore sharding on v7x
            vmem_limit_bytes=vmem_limit,
        ),
        cost_estimate=pl.CostEstimate(
            flops=rows * w,
            transcendentals=0,
            bytes_accessed=2 * rows * w * itemsize,
        ),
    )(x2d)


def trivialnet_forward(x):
    """F.relu(x) for an arbitrary-shaped input; Pallas on the bandwidth-bound sizes."""
    orig_shape = x.shape
    dtype = x.dtype
    n = x.size
    itemsize = jnp.dtype(dtype).itemsize
    total_bytes = n * itemsize
    zero = jnp.zeros((), dtype=dtype)

    if n == 0 or total_bytes <= _XLA_BYPASS_BYTES:
        # KB-scale: custom-call dispatch + forced HBM round trip costs far more than
        # the op itself; let XLA fuse the ReLU into its producer/consumer.
        return jnp.maximum(x, zero)

    tile_bytes = _tile_bytes_for_this_chip()
    x_flat = jnp.ravel(x)

    w = _choose_width(n)
    if w is not None:
        out_flat = _relu_2d(x_flat.reshape(n // w, w), tile_bytes).reshape(-1)
    else:
        # Ragged element count: stream the 128-aligned prefix through the kernel and
        # handle the tiny tail with plain jnp.maximum (no jnp.pad materialization).
        n_main = (n // _LANES) * _LANES
        w_main = _choose_width(n_main)
        out_main = _relu_2d(
            x_flat[:n_main].reshape(n_main // w_main, w_main), tile_bytes
        ).reshape(-1)
        out_tail = jnp.maximum(x_flat[n_main:], zero)
        out_flat = jnp.concatenate([out_main, out_tail])

    return out_flat.reshape(orig_shape)


if __name__ == "__main__":
    key = jax.random.PRNGKey(0)
    k1, k2, k3, k4 = jax.random.split(key, 4)

    # 1) Small NCHW input consistent with the module's forward: [2, 4, 16, 16] (8 KiB).
    #    Routed through the fused-XLA bypass path.
    x_small = jax.random.normal(k1, (2, 4, 16, 16), dtype=jnp.float32)
    y_small = jax.block_until_ready(trivialnet_forward(x_small))
    assert y_small.shape == x_small.shape and y_small.dtype == x_small.dtype
    assert bool(jnp.all(y_small == jnp.maximum(x_small, 0.0)))

    # 2) Mid-size input (256 KiB): exercises the single-block (no-grid) Pallas path.
    x_mid = jax.random.normal(k2, (2, 8, 64, 64), dtype=jnp.float32)
    y_mid = jax.block_until_ready(trivialnet_forward(x_mid))
    assert y_mid.shape == x_mid.shape and y_mid.dtype == x_mid.dtype
    assert bool(jnp.all(y_mid == jnp.maximum(x_mid, 0.0)))

    # 3) Large input (32 MiB): exercises the tiled, pipelined, megacore-parallel path
    #    with multiple grid steps on every TPU generation.
    x_big = jax.random.normal(k3, (8, 64, 128, 128), dtype=jnp.float32)
    y_big = jax.block_until_ready(trivialnet_forward(x_big))
    assert y_big.shape == x_big.shape and y_big.dtype == x_big.dtype
    assert bool(jnp.all(y_big == jnp.maximum(x_big, 0.0)))

    # 4) Ragged element count (n % 128 != 0, > 512 KiB): prefix-kernel + tail-max path.
    x_rag = jax.random.normal(k4, (200_000,), dtype=jnp.float32)
    y_rag = jax.block_until_ready(trivialnet_forward(x_rag))
    assert y_rag.shape == x_rag.shape and y_rag.dtype == x_rag.dtype
    assert bool(jnp.all(y_rag == jnp.maximum(x_rag, 0.0)))

    print("KERNEL_OK")
</pallas_src>

<mosaic_0001>
module attributes {stable_mosaic.version = 11 : i64} {
  func.func @relu_kernel(%arg0: memref<16x4096xf32, #tpu.memory_space<vmem>>, %arg1: memref<16x4096xf32, #tpu.memory_space<vmem>>) attributes {dimension_semantics = [], scalar_prefetch = 0 : i64, scratch_operands = 0 : i64, tpu.core_type = #tpu.core_type<tc>} {
    %c0 = arith.constant 0 : index
    %c0_0 = arith.constant 0 : index
    %0 = vector.load %arg0[%c0, %c0_0] : memref<16x4096xf32, #tpu.memory_space<vmem>>, vector<16x4096xf32>
    %cst = arith.constant 0.000000e+00 : f32
    %1 = vector.broadcast %cst : f32 to vector<16x4096xf32>
    %2 = arith.maximumf %0, %1 : vector<16x4096xf32>
    %c0_1 = arith.constant 0 : index
    %c0_2 = arith.constant 0 : index
    %3 = vector.load %arg1[%c0_1, %c0_2] : memref<16x4096xf32, #tpu.memory_space<vmem>>, vector<16x4096xf32>
    tpu.vector_store %arg1[%c0_1, %c0_2], %2 {strides = array<i32>} : memref<16x4096xf32, #tpu.memory_space<vmem>>, vector<16x4096xf32>,
    return
  }
}

</mosaic_0001>

<bundles_post_ra>
// kernel: tpu_custom_call.1
= control target key start
LH: loop header
LB: loop body
LE: loop exit
PB: predicated region body
PF: predicated region fallthrough
CT: control target
= control target key end

     0   :  { %6 = vsyncpa [#allocation3], 0  ;;  %s331_s0 = inlined_call_operand.hbm [shape: f32[16,4096], index: 0, kind: input, shape index: {}]   ;;  %s332_s1 = inlined_call_operand.hbm [shape: f32[16,4096], index: 1, kind: output, shape index: {}]  }
   0x1   :  { %7 = vsyncpa [#allocation4], 0  ;;  %s284_s6 = smov [#allocation2]   ;;  %s236_s10 = scalar_lea.hbm %s331_s0, 8192 }
   0x2   :  { %s13_s7 = sshll.u32 %s284_s6, 4  ;;  %p237_p0 = scmp.ne.s32.totalorder %s331_s0, %s236_s10  ;;  %s14_s7 = int_to_ptr.vmem [resolvable:$true] %s13_s7 }
   0x3   :  { %p240_p1 = scmp.lt.u32.totalorder %s236_s10, %s331_s0 }
   0x5   :  { %p242_p2 = pnand %p240_p1, %p237_p0 }
   0x7   :  { %245 = shalt.err (!%p242_p2)
}
   0x8   :  { %s246_s15 = scalar_lea.vmem %s14_s7, 8192  ;;  %p251_p4 = scmp.lt.s32.totalorder %s14_s7, %s14_s7 }
   0x9   :  { %p247_p3 = scmp.ne.s32.totalorder %s14_s7, %s246_s15  ;;  %p252_p5 = scmp.lt.s32.totalorder %s246_s15, %s246_s15 }
   0xb   :  { %p253_p6 = por %p252_p5, %p251_p4 }
   0xd   :  { %p254_p7 = pnand %p253_p6, %p247_p3 }
   0xf   :  { %257 = shalt.err (!%p254_p7)
}
  0x10   :  { %s285_s16 = smov 4096   ;;  %s286_s17 = smov 256  }
  0x11   :  { %19 = dma.hbm_to_vmem [thread:$0]  %s331_s0, 8192, %s14_s7, [#allocation3], %s285_s16, %s285_s16, %s286_s17  }
  0x12   :  { %280 = dma.done.wait [#allocation3], 8192  }
  0x13   :  { %281 = vsyncadd [#allocation3], 4294959104  ;;  %v23_v0 = vld [vmem:[#allocation2] sm:$0xff]  ;;  %v24_v1 = vld [vmem:[#allocation2 + $0x8] sm:$0xff]  ;;  %s287_s20 = smov [#allocation5]  }
  0x14   :  { %v25_v2 = vld [vmem:[#allocation2 + $0x10] sm:$0xff]  ;;  %s313_s21 = sshll.u32 %s287_s20, 4  ;;  %v87_v3 = vmax.f32 %v23_v0, 0.0  ;;  %v88_v4 = vmax.f32 %v24_v1, 0.0  ;;  %v26_v6 = vld [vmem:[#allocation2 + $0x18] sm:$0xff]  ;;  %v27_v7 = vld [vmem:[#allocation2 + $0x20] sm:$0xff]  ;;  %s221_s21 = int_to_ptr.vmem [resolvable:$true] %s313_s21 }
  0x15   :  { %v89_v5 = vmax.f32 %v25_v2, 0.0  ;;  %v28_v8 = vld [vmem:[#allocation2 + $0x28] sm:$0xff]  ;;  %v90_v9 = vmax.f32 %v26_v6, 0.0  ;;  %v91_v10 = vmax.f32 %v27_v7, 0.0  ;;  %v29_v12 = vld [vmem:[#allocation2 + $0x30] sm:$0xff]  ;;  %v30_v13 = vld [vmem:[#allocation2 + $0x38] sm:$0xff]  ;;  %p263_p9 = scmp.lt.s32.totalorder %s221_s21, %s221_s21 }
  0x16   :  { %v92_v11 = vmax.f32 %v28_v8, 0.0  ;;  %v31_v14 = vld [vmem:[#allocation2 + $0x40] sm:$0xff]  ;;  %151 = vst [vmem:[#allocation5] sm:$0xff] %v87_v3  ;;  %152 = vst [vmem:[#allocation5 + $0x8] sm:$0xff] %v88_v4  ;;  %v93_v15 = vmax.f32 %v29_v12, 0.0  ;;  %v94_v16 = vmax.f32 %v30_v13, 0.0 }
  0x17   :  { %153 = vst [vmem:[#allocation5 + $0x10] sm:$0xff] %v89_v5  ;;  %v95_v17 = vmax.f32 %v31_v14, 0.0  ;;  %v32_v18 = vld [vmem:[#allocation2 + $0x48] sm:$0xff]  ;;  %v33_v19 = vld [vmem:[#allocation2 + $0x50] sm:$0xff]  ;;  %v34_v20 = vld [vmem:[#allocation2 + $0x58] sm:$0xff]  ;;  %s258_s0 = scalar_lea.vmem %s221_s21, 8192 }
  0x18   :  { %154 = vst [vmem:[#allocation5 + $0x18] sm:$0xff] %v90_v9  ;;  %155 = vst [vmem:[#allocation5 + $0x20] sm:$0xff] %v91_v10  ;;  %v96_v21 = vmax.f32 %v32_v18, 0.0  ;;  %v97_v22 = vmax.f32 %v33_v19, 0.0  ;;  %v98_v23 = vmax.f32 %v34_v20, 0.0  ;;  %v35_v24 = vld [vmem:[#allocation2 + $0x60] sm:$0xff]  ;;  %p259_p8 = scmp.ne.s32.totalorder %s221_s21, %s258_s0  ;;  %p264_p10 = scmp.lt.s32.totalorder %s258_s0, %s258_s0 }
  0x19   :  { %156 = vst [vmem:[#allocation5 + $0x28] sm:$0xff] %v92_v11  ;;  %v36_v25 = vld [vmem:[#allocation2 + $0x68] sm:$0xff]  ;;  %v37_v26 = vld [vmem:[#allocation2 + $0x70] sm:$0xff]  ;;  %157 = vst [vmem:[#allocation5 + $0x30] sm:$0xff] %v93_v15  ;;  %v99_v27 = vmax.f32 %v35_v24, 0.0 }
  0x1a   :  { %158 = vst [vmem:[#allocation5 + $0x38] sm:$0xff] %v94_v16  ;;  %159 = vst [vmem:[#allocation5 + $0x40] sm:$0xff] %v95_v17  ;;  %v100_v28 = vmax.f32 %v36_v25, 0.0  ;;  %v101_v29 = vmax.f32 %v37_v26, 0.0  ;;  %v38_v30 = vld [vmem:[#allocation2 + $0x78] sm:$0xff]  ;;  %v39_v31 = vld [vmem:[#allocation2 + $0x80] sm:$0xff]  ;;  %p265_p11 = por %p264_p10, %p263_p9 }
  0x1b   :  { %v40_v32 = vld [vmem:[#allocation2 + $0x88] sm:$0xff]  ;;  %160 = vst [vmem:[#allocation5 + $0x48] sm:$0xff] %v96_v21  ;;  %161 = vst [vmem:[#allocation5 + $0x50] sm:$0xff] %v97_v22  ;;  %v102_v33 = vmax.f32 %v38_v30, 0.0  ;;  %v103_v34 = vmax.f32 %v39_v31, 0.0  ;;  %v41_v36 = vld [vmem:[#allocation2 + $0x90] sm:$0xff] }
  0x1c   :  { %162 = vst [vmem:[#allocation5 + $0x58] sm:$0xff] %v98_v23  ;;  %v104_v35 = vmax.f32 %v40_v32, 0.0  ;;  %v42_v37 = vld [vmem:[#allocation2 + $0x98] sm:$0xff]  ;;  %v43_v38 = vld [vmem:[#allocation2 + $0xa0] sm:$0xff]  ;;  %163 = vst [vmem:[#allocation5 + $0x60] sm:$0xff] %v99_v27  ;;  %v105_v39 = vmax.f32 %v41_v36, 0.0  ;;  %p266_p12 = pnand %p265_p11, %p259_p8 }
  0x1d   :  { %164 = vst [vmem:[#allocation5 + $0x68] sm:$0xff] %v100_v28  ;;  %165 = vst [vmem:[#allocation5 + $0x70] sm:$0xff] %v101_v29  ;;  %v106_v40 = vmax.f32 %v42_v37, 0.0  ;;  %v107_v41 = vmax.f32 %v43_v38, 0.0  ;;  %v44_v42 = vld [vmem:[#allocation2 + $0xa8] sm:$0xff]  ;;  %v45_v43 = vld [vmem:[#allocation2 + $0xb0] sm:$0xff] }
  0x1e   :  { %v46_v44 = vld [vmem:[#allocation2 + $0xb8] sm:$0xff]  ;;  %166 = vst [vmem:[#allocation5 + $0x78] sm:$0xff] %v102_v33  ;;  %167 = vst [vmem:[#allocation5 + $0x80] sm:$0xff] %v103_v34  ;;  %v108_v45 = vmax.f32 %v44_v42, 0.0  ;;  %v109_v46 = vmax.f32 %v45_v43, 0.0  ;;  %v47_v48 = vld [vmem:[#allocation2 + $0xc0] sm:$0xff] }
  0x1f   :  { %168 = vst [vmem:[#allocation5 + $0x88] sm:$0xff] %v104_v35  ;;  %v110_v47 = vmax.f32 %v46_v44, 0.0  ;;  %v48_v49 = vld [vmem:[#allocation2 + $0xc8] sm:$0xff]  ;;  %v49_v50 = vld [vmem:[#allocation2 + $0xd0] sm:$0xff]  ;;  %169 = vst [vmem:[#allocation5 + $0x90] sm:$0xff] %v105_v39  ;;  %v111_v51 = vmax.f32 %v47_v48, 0.0 }
  0x20   :  { %170 = vst [vmem:[#allocation5 + $0x98] sm:$0xff] %v106_v40  ;;  %171 = vst [vmem:[#allocation5 + $0xa0] sm:$0xff] %v107_v41  ;;  %v112_v52 = vmax.f32 %v48_v49, 0.0  ;;  %v113_v53 = vmax.f32 %v49_v50, 0.0  ;;  %v50_v54 = vld [vmem:[#allocation2 + $0xd8] sm:$0xff]  ;;  %v51_v55 = vld [vmem:[#allocation2 + $0xe0] sm:$0xff] }
  0x21   :  { %v52_v56 = vld [vmem:[#allocation2 + $0xe8] sm:$0xff]  ;;  %172 = vst [vmem:[#allocation5 + $0xa8] sm:$0xff] %v108_v45  ;;  %173 = vst [vmem:[#allocation5 + $0xb0] sm:$0xff] %v109_v46  ;;  %v114_v57 = vmax.f32 %v50_v54, 0.0  ;;  %v115_v58 = vmax.f32 %v51_v55, 0.0  ;;  %v53_v60 = vld [vmem:[#allocation2 + $0xf0] sm:$0xff] }
  0x22   :  { %174 = vst [vmem:[#allocation5 + $0xb8] sm:$0xff] %v110_v47  ;;  %v116_v59 = vmax.f32 %v52_v56, 0.0  ;;  %v54_v61 = vld [vmem:[#allocation2 + $0xf8] sm:$0xff]  ;;  %v55_v62 = vld [vmem:[#allocation2 + $0x100] sm:$0xff]  ;;  %175 = vst [vmem:[#allocation5 + $0xc0] sm:$0xff] %v111_v51  ;;  %v117_v63 = vmax.f32 %v53_v60, 0.0 }
  0x23   :  { %176 = vst [vmem:[#allocation5 + $0xc8] sm:$0xff] %v112_v52  ;;  %177 = vst [vmem:[#allocation5 + $0xd0] sm:$0xff] %v113_v53  ;;  %v118_v0 = vmax.f32 %v54_v61, 0.0  ;;  %v119_v1 = vmax.f32 %v55_v62, 0.0  ;;  %v56_v2 = vld [vmem:[#allocation2 + $0x108] sm:$0xff]  ;;  %v57_v3 = vld [vmem:[#allocation2 + $0x110] sm:$0xff] }
  0x24   :  { %v58_v4 = vld [vmem:[#allocation2 + $0x118] sm:$0xff]  ;;  %178 = vst [vmem:[#allocation5 + $0xd8] sm:$0xff] %v114_v57  ;;  %179 = vst [vmem:[#allocation5 + $0xe0] sm:$0xff] %v115_v58  ;;  %v120_v5 = vmax.f32 %v56_v2, 0.0  ;;  %v121_v6 = vmax.f32 %v57_v3, 0.0  ;;  %v59_v8 = vld [vmem:[#allocation2 + $0x120] sm:$0xff] }
  0x25   :  { %180 = vst [vmem:[#allocation5 + $0xe8] sm:$0xff] %v116_v59  ;;  %v122_v7 = vmax.f32 %v58_v4, 0.0  ;;  %v60_v9 = vld [vmem:[#allocation2 + $0x128] sm:$0xff]  ;;  %v61_v10 = vld [vmem:[#allocation2 + $0x130] sm:$0xff]  ;;  %181 = vst [vmem:[#allocation5 + $0xf0] sm:$0xff] %v117_v63  ;;  %v123_v11 = vmax.f32 %v59_v8, 0.0 }
  0x26   :  { %182 = vst [vmem:[#allocation5 + $0xf8] sm:$0xff] %v118_v0  ;;  %183 = vst [vmem:[#allocation5 + $0x100] sm:$0xff] %v119_v1  ;;  %v124_v12 = vmax.f32 %v60_v9, 0.0  ;;  %v125_v13 = vmax.f32 %v61_v10, 0.0  ;;  %v62_v14 = vld [vmem:[#allocation2 + $0x138] sm:$0xff]  ;;  %v63_v15 = vld [vmem:[#allocation2 + $0x140] sm:$0xff] }
  0x27   :  { %v64_v16 = vld [vmem:[#allocation2 + $0x148] sm:$0xff]  ;;  %184 = vst [vmem:[#allocation5 + $0x108] sm:$0xff] %v120_v5  ;;  %185 = vst [vmem:[#allocation5 + $0x110] sm:$0xff] %v121_v6  ;;  %v126_v17 = vmax.f32 %v62_v14, 0.0  ;;  %v127_v18 = vmax.f32 %v63_v15, 0.0  ;;  %v65_v20 = vld [vmem:[#allocation2 + $0x150] sm:$0xff] }
  0x28   :  { %186 = vst [vmem:[#allocation5 + $0x118] sm:$0xff] %v122_v7  ;;  %v128_v19 = vmax.f32 %v64_v16, 0.0  ;;  %v66_v21 = vld [vmem:[#allocation2 + $0x158] sm:$0xff]  ;;  %v67_v22 = vld [vmem:[#allocation2 + $0x160] sm:$0xff]  ;;  %187 = vst [vmem:[#allocation5 + $0x120] sm:$0xff] %v123_v11  ;;  %v129_v23 = vmax.f32 %v65_v20, 0.0 }
  0x29   :  { %188 = vst [vmem:[#allocation5 + $0x128] sm:$0xff] %v124_v12  ;;  %189 = vst [vmem:[#allocation5 + $0x130] sm:$0xff] %v125_v13  ;;  %v130_v24 = vmax.f32 %v66_v21, 0.0  ;;  %v131_v25 = vmax.f32 %v67_v22, 0.0  ;;  %v68_v26 = vld [vmem:[#allocation2 + $0x168] sm:$0xff]  ;;  %v69_v27 = vld [vmem:[#allocation2 + $0x170] sm:$0xff] }
  0x2a   :  { %v70_v28 = vld [vmem:[#allocation2 + $0x178] sm:$0xff]  ;;  %190 = vst [vmem:[#allocation5 + $0x138] sm:$0xff] %v126_v17  ;;  %191 = vst [vmem:[#allocation5 + $0x140] sm:$0xff] %v127_v18  ;;  %v132_v29 = vmax.f32 %v68_v26, 0.0  ;;  %v133_v30 = vmax.f32 %v69_v27, 0.0  ;;  %v71_v32 = vld [vmem:[#allocation2 + $0x180] sm:$0xff] }
  0x2b   :  { %192 = vst [vmem:[#allocation5 + $0x148] sm:$0xff] %v128_v19  ;;  %v134_v31 = vmax.f32 %v70_v28, 0.0  ;;  %v72_v33 = vld [vmem:[#allocation2 + $0x188] sm:$0xff]  ;;  %v73_v34 = vld [vmem:[#allocation2 + $0x190] sm:$0xff]  ;;  %193 = vst [vmem:[#allocation5 + $0x150] sm:$0xff] %v129_v23  ;;  %v135_v35 = vmax.f32 %v71_v32, 0.0 }
  0x2c   :  { %194 = vst [vmem:[#allocation5 + $0x158] sm:$0xff] %v130_v24  ;;  %195 = vst [vmem:[#allocation5 + $0x160] sm:$0xff] %v131_v25  ;;  %v136_v36 = vmax.f32 %v72_v33, 0.0  ;;  %v137_v37 = vmax.f32 %v73_v34, 0.0  ;;  %v74_v38 = vld [vmem:[#allocation2 + $0x198] sm:$0xff]  ;;  %v75_v39 = vld [vmem:[#allocation2 + $0x1a0] sm:$0xff] }
  0x2d   :  { %v76_v40 = vld [vmem:[#allocation2 + $0x1a8] sm:$0xff]  ;;  %196 = vst [vmem:[#allocation5 + $0x168] sm:$0xff] %v132_v29  ;;  %197 = vst [vmem:[#allocation5 + $0x170] sm:$0xff] %v133_v30  ;;  %v138_v41 = vmax.f32 %v74_v38, 0.0  ;;  %v139_v42 = vmax.f32 %v75_v39, 0.0  ;;  %v77_v44 = vld [vmem:[#allocation2 + $0x1b0] sm:$0xff] }
  0x2e   :  { %198 = vst [vmem:[#allocation5 + $0x178] sm:$0xff] %v134_v31  ;;  %v140_v43 = vmax.f32 %v76_v40, 0.0  ;;  %v78_v45 = vld [vmem:[#allocation2 + $0x1b8] sm:$0xff]  ;;  %v79_v46 = vld [vmem:[#allocation2 + $0x1c0] sm:$0xff]  ;;  %199 = vst [vmem:[#allocation5 + $0x180] sm:$0xff] %v135_v35  ;;  %v141_v47 = vmax.f32 %v77_v44, 0.0 }
  0x2f   :  { %200 = vst [vmem:[#allocation5 + $0x188] sm:$0xff] %v136_v36  ;;  %201 = vst [vmem:[#allocation5 + $0x190] sm:$0xff] %v137_v37  ;;  %v142_v48 = vmax.f32 %v78_v45, 0.0  ;;  %v143_v49 = vmax.f32 %v79_v46, 0.0  ;;  %v80_v50 = vld [vmem:[#allocation2 + $0x1c8] sm:$0xff]  ;;  %v81_v51 = vld [vmem:[#allocation2 + $0x1d0] sm:$0xff] }
  0x30   :  { %v82_v52 = vld [vmem:[#allocation2 + $0x1d8] sm:$0xff]  ;;  %202 = vst [vmem:[#allocation5 + $0x198] sm:$0xff] %v138_v41  ;;  %203 = vst [vmem:[#allocation5 + $0x1a0] sm:$0xff] %v139_v42  ;;  %v144_v53 = vmax.f32 %v80_v50, 0.0  ;;  %v145_v54 = vmax.f32 %v81_v51, 0.0  ;;  %v83_v56 = vld [vmem:[#allocation2 + $0x1e0] sm:$0xff] }
  0x31   :  { %204 = vst [vmem:[#allocation5 + $0x1a8] sm:$0xff] %v140_v43  ;;  %v146_v55 = vmax.f32 %v82_v52, 0.0  ;;  %v84_v57 = vld [vmem:[#allocation2 + $0x1e8] sm:$0xff]  ;;  %v85_v58 = vld [vmem:[#allocation2 + $0x1f0] sm:$0xff]  ;;  %205 = vst [vmem:[#allocation5 + $0x1b0] sm:$0xff] %v141_v47  ;;  %v147_v59 = vmax.f32 %v83_v56, 0.0 }
  0x32   :  { %206 = vst [vmem:[#allocation5 + $0x1b8] sm:$0xff] %v142_v48  ;;  %207 = vst [vmem:[#allocation5 + $0x1c0] sm:$0xff] %v143_v49  ;;  %v148_v60 = vmax.f32 %v84_v57, 0.0  ;;  %v149_v61 = vmax.f32 %v85_v58, 0.0  ;;  %v86_v62 = vld [vmem:[#allocation2 + $0x1f8] sm:$0xff] }
  0x33   :  { %208 = vst [vmem:[#allocation5 + $0x1c8] sm:$0xff] %v144_v53  ;;  %209 = vst [vmem:[#allocation5 + $0x1d0] sm:$0xff] %v145_v54  ;;  %v150_v63 = vmax.f32 %v86_v62, 0.0 }
  0x34   :  { %210 = vst [vmem:[#allocation5 + $0x1d8] sm:$0xff] %v146_v55  ;;  %211 = vst [vmem:[#allocation5 + $0x1e0] sm:$0xff] %v147_v59 }
  0x35   :  { %212 = vst [vmem:[#allocation5 + $0x1e8] sm:$0xff] %v148_v60  ;;  %213 = vst [vmem:[#allocation5 + $0x1f0] sm:$0xff] %v149_v61 }
  0x36   :  { %214 = vst [vmem:[#allocation5 + $0x1f8] sm:$0xff] %v150_v63 }
  0x37   :  { %269 = shalt.err (!%p266_p12)
}
  0x38   :  { %s270_s24 = scalar_lea.hbm %s332_s1, 8192 }
  0x39   :  { %p271_p13 = scmp.ne.s32.totalorder %s332_s1, %s270_s24  ;;  %p274_p0 = scmp.lt.u32.totalorder %s270_s24, %s332_s1 }
  0x3b   :  { %p276_p1 = pnand %p274_p0, %p271_p13 }
  0x3d   :  { %279 = shalt.err (!%p276_p1)
}
  0x3e   :  { %226 = dma.vmem_to_hbm [thread:$0]  %s221_s21, 8192, %s332_s1, [#allocation4], %s285_s16, %s285_s16, %s286_s17  }
  0x3f   :  { %282 = dma.done.wait [#allocation4], 8192  }
  0x40   :  { %283 = vsyncadd [#allocation4], 4294959104 }
  0x41   :  { %230 = vsyncpa [#allocation3], 1 }
  0x42   :  { %231 = vsyncpa [#allocation4], 1 }

</bundles_post_ra>
